<compile_context>
chip_gen: v6e
topology: v6e:2x2x1
jax: 0.10.0
libtpu: 0.0.40
codegen_flags: <defaults>
</compile_context>

<pallas_src>
import numpy as np
import jax
import jax.numpy as jnp
from jax.experimental import pallas as pl
from jax.experimental.pallas import tpu as pltpu

N, CIN, COUT, H, W = 2, 4, 8, 16, 16
EPS = 1e-5

WC_IN = W * CIN           # 64  : fused (W, CIN) lane width of the input
WC_OUT = W * COUT         # 128 : fused (W, COUT) lane width of the output
K1 = 3 * WC_IN            # 192 : fused contraction dim for conv1 (+ shortcut)
K2 = 3 * WC_OUT           # 384 : fused contraction dim for conv2
N1 = 2 * WC_OUT           # 256 : conv1 + shortcut fused output lanes


def _residual_block_kernel(lhs1_ref, w1sc_ref, w2_ref, bias_ref, o_ref):
    f32 = jnp.float32
    bf16 = jnp.bfloat16

    t1 = bias_ref[0:1, :]          # bn1 bias  (scale folded into w1)
    tsc = bias_ref[1:2, :]         # shortcut bn bias
    t2 = bias_ref[2:3, :]          # bn2 bias

    # conv1 (3x3) and the 1x1 shortcut in ONE MXU matmul:
    #   (H, 192) @ (192, 256) -> (H, 256); cols [0:128] = conv1, [128:256] = sc.
    acc = jnp.dot(lhs1_ref[...], w1sc_ref[...], preferred_element_type=f32)
    out1 = jnp.maximum(acc[:, :WC_OUT] + t1, 0.0)        # bn1 + relu
    sc = acc[:, WC_OUT:] + tsc                           # shortcut bn

    # conv2: build dy-shifted rows in vregs (zero rows = vertical zero pad),
    # fuse along the contraction dim -> one matmul (H, 384) @ (384, 128).
    zrow = jnp.zeros((1, WC_OUT), f32)
    up = jnp.concatenate([zrow, out1[:H - 1, :]], axis=0)    # row r-1
    down = jnp.concatenate([out1[1:, :], zrow], axis=0)      # row r+1
    lhs2 = jnp.concatenate([up, out1, down], axis=1).astype(bf16)
    out2 = jnp.dot(lhs2, w2_ref[...], preferred_element_type=f32) + t2

    # residual add + final relu
    o_ref[...] = jnp.maximum(out2 + sc, 0.0)


def _banded(k_dy, reps):
    # k_dy: (3, ci, co) taps indexed by dx. Returns (reps*ci, reps*co) banded
    # matrix: input column w_in feeds output column w_out = w_in + 1 - dx; the
    # band truncation at the edges encodes the horizontal zero padding.
    return sum(jnp.kron(jnp.eye(reps, k=1 - dx, dtype=k_dy.dtype), k_dy[dx])
               for dx in range(3))


def _fold_bn(bn):
    g, b, m, v = bn
    s = g / jnp.sqrt(v + EPS)
    t = b - m * s
    # tile over W so they broadcast over the fused (W, COUT) lane dim
    return jnp.tile(s, W)[None, :], jnp.tile(t, W)[None, :]


@jax.jit
def residual_block(x_nchw, w1, w2, wsc, bn1, bn2, bnsc):
    bf16 = jnp.bfloat16

    s1, t1 = _fold_bn(bn1)
    s2, t2 = _fold_bn(bn2)
    ssc, tsc = _fold_bn(bnsc)

    # --- conv1 LHS: channels-last, (W,C) fused into lanes, dy taps fused into
    #     the contraction dim with the vertical zero pad baked in -------------
    x_nhwc = jnp.transpose(x_nchw, (0, 2, 3, 1))            # (N,H,W,CIN)
    x2d = x_nhwc.reshape(N, H, WC_IN)
    zero = jnp.zeros((N, 1, WC_IN), x2d.dtype)
    up = jnp.concatenate([zero, x2d[:, :H - 1]], axis=1)    # x[r-1]
    down = jnp.concatenate([x2d[:, 1:], zero], axis=1)      # x[r+1]
    lhs1 = jnp.concatenate([up, x2d, down], axis=2)         # (N,H,192)
    lhs1 = lhs1.reshape(N * H, K1).astype(bf16)

    # --- weights: banded over dx (horizontal pad folded in), dy taps stacked
    #     along K, BN scales folded in, 1x1 shortcut appended along the output
    #     lane dim -> one (192, 256) RHS for conv1+shortcut, (384, 128) for
    #     conv2 ---------------------------------------------------------------
    w1_t = jnp.transpose(w1, (2, 3, 1, 0))                  # (3,3,CIN,COUT)
    w2_t = jnp.transpose(w2, (2, 3, 1, 0))                  # (3,3,COUT,COUT)
    w1_f = jnp.concatenate([_banded(w1_t[dy], W) for dy in range(3)],
                           axis=0) * s1                      # (192,128)
    w2_f = (jnp.concatenate([_banded(w2_t[dy], W) for dy in range(3)],
                            axis=0) * s2).astype(bf16)       # (384,128)
    wsc_f = jnp.kron(jnp.eye(W, dtype=wsc.dtype),
                     wsc[:, :, 0, 0].T) * ssc                # (64,128)
    zpad = jnp.zeros((WC_IN, WC_OUT), wsc_f.dtype)
    wsc_col = jnp.concatenate([zpad, wsc_f, zpad], axis=0)   # shortcut = dy=1 rows
    w1sc = jnp.concatenate([w1_f, wsc_col], axis=1).astype(bf16)   # (192,256)

    bias = jnp.concatenate([t1, tsc, t2], axis=0)            # (3,128) f32

    flops = 2 * N * H * (K1 * N1 + K2 * WC_OUT)
    bytes_accessed = (lhs1.size * 2 + w1sc.size * 2 + w2_f.size * 2
                      + bias.size * 4 + N * H * WC_OUT * 4)

    out2d = pl.pallas_call(
        _residual_block_kernel,
        out_shape=jax.ShapeDtypeStruct((N * H, WC_OUT), jnp.float32),
        grid_spec=pltpu.PrefetchScalarGridSpec(
            num_scalar_prefetch=0,
            grid=(N,),                           # one image per grid step
            in_specs=[
                pl.BlockSpec((H, K1), lambda n: (n, 0)),
                pl.BlockSpec((K1, N1), lambda n: (0, 0)),
                pl.BlockSpec((K2, WC_OUT), lambda n: (0, 0)),
                pl.BlockSpec((3, WC_OUT), lambda n: (0, 0)),
            ],
            out_specs=pl.BlockSpec((H, WC_OUT), lambda n: (n, 0)),
        ),
        compiler_params=pltpu.CompilerParams(
            dimension_semantics=("parallel",)),
        cost_estimate=pl.CostEstimate(flops=flops, transcendentals=0,
                                      bytes_accessed=bytes_accessed),
    )(lhs1, w1sc, w2_f, bias)

    # Unfuse lanes, back to NCHW.
    out_nhwc = out2d.reshape(N, H, W, COUT)
    return jnp.transpose(out_nhwc, (0, 3, 1, 2))


def reference_forward(x, w1, w2, wsc, bn1, bn2, bnsc):
    def conv(a, w, pad):
        return jax.lax.conv_general_dilated(
            a, w, window_strides=(1, 1), padding=[(pad, pad), (pad, pad)],
            dimension_numbers=("NCHW", "OIHW", "NCHW"),
            precision=jax.lax.Precision.HIGHEST)

    def bn(a, p):
        g, b, m, v = p
        return (a - m[None, :, None, None]) / jnp.sqrt(v[None, :, None, None] + EPS) \
            * g[None, :, None, None] + b[None, :, None, None]

    out = jax.nn.relu(bn(conv(x, w1, 1), bn1))
    out = bn(conv(out, w2, 1), bn2)
    out = out + bn(conv(x, wsc, 0), bnsc)
    return jax.nn.relu(out)


if __name__ == "__main__":
    key = jax.random.PRNGKey(0)
    ks = jax.random.split(key, 8)

    x_nchw = jax.random.normal(ks[0], (N, CIN, H, W), jnp.float32)

    # Deterministic synthetic parameters (shapes follow the module __init__).
    w1 = 0.2 * jax.random.normal(ks[1], (COUT, CIN, 3, 3), jnp.float32)
    w2 = 0.2 * jax.random.normal(ks[2], (COUT, COUT, 3, 3), jnp.float32)
    wsc = 0.2 * jax.random.normal(ks[3], (COUT, CIN, 1, 1), jnp.float32)

    def bn_params(k):
        k1, k2, k3, k4 = jax.random.split(k, 4)
        gamma = 1.0 + 0.1 * jax.random.normal(k1, (COUT,), jnp.float32)
        beta = 0.1 * jax.random.normal(k2, (COUT,), jnp.float32)
        mean = 0.1 * jax.random.normal(k3, (COUT,), jnp.float32)
        var = jnp.abs(jax.random.normal(k4, (COUT,), jnp.float32)) + 0.5
        return gamma, beta, mean, var

    bn1 = bn_params(ks[4])
    bn2 = bn_params(ks[5])
    bnsc = bn_params(ks[6])

    out = residual_block(x_nchw, w1, w2, wsc, bn1, bn2, bnsc)
    out = jax.block_until_ready(out)

    ref = reference_forward(x_nchw, w1, w2, wsc, bn1, bn2, bnsc)
    ref = jax.block_until_ready(ref)

    if np.allclose(np.asarray(out), np.asarray(ref), rtol=2e-2, atol=2e-2):
        print("KERNEL_OK")
    else:
        print("KERNEL_MISMATCH",
              float(np.max(np.abs(np.asarray(out) - np.asarray(ref)))))
</pallas_src>

<mosaic_0001>
module attributes {stable_mosaic.version = 11 : i64} {
  func.func @_residual_block_kernel(%arg0: i32, %arg1: memref<16x192xbf16, #tpu.memory_space<vmem>>, %arg2: memref<192x256xbf16, #tpu.memory_space<vmem>>, %arg3: memref<384x128xbf16, #tpu.memory_space<vmem>>, %arg4: memref<3x128xf32, #tpu.memory_space<vmem>>, %arg5: memref<16x128xf32, #tpu.memory_space<vmem>>) attributes {dimension_semantics = [#tpu.dimension_semantics<parallel>], iteration_bounds = array<i64: 2>, scalar_prefetch = 0 : i64, scratch_operands = 0 : i64, tpu.core_type = #tpu.core_type<tc>, window_params = [{transform_indices = @transform_0, window_bounds = array<i64: 16, 192>}, {pipeline_mode = #tpu.pipeline_mode<synchronous>, transform_indices = @transform_1, window_bounds = array<i64: 192, 256>}, {pipeline_mode = #tpu.pipeline_mode<synchronous>, transform_indices = @transform_2, window_bounds = array<i64: 384, 128>}, {pipeline_mode = #tpu.pipeline_mode<synchronous>, transform_indices = @transform_3, window_bounds = array<i64: 3, 128>}, {transform_indices = @transform_4, window_bounds = array<i64: 16, 128>}]} {
    %c0 = arith.constant 0 : index
    %c0_0 = arith.constant 0 : index
    %0 = vector.load %arg4[%c0, %c0_0] : memref<3x128xf32, #tpu.memory_space<vmem>>, vector<1x128xf32>
    %c1 = arith.constant 1 : index
    %c0_1 = arith.constant 0 : index
    %1 = vector.load %arg4[%c1, %c0_1] : memref<3x128xf32, #tpu.memory_space<vmem>>, vector<1x128xf32>
    %c2 = arith.constant 2 : index
    %c0_2 = arith.constant 0 : index
    %2 = vector.load %arg4[%c2, %c0_2] : memref<3x128xf32, #tpu.memory_space<vmem>>, vector<1x128xf32>
    %c0_3 = arith.constant 0 : index
    %c0_4 = arith.constant 0 : index
    %3 = vector.load %arg1[%c0_3, %c0_4] : memref<16x192xbf16, #tpu.memory_space<vmem>>, vector<16x192xbf16>
    %c0_5 = arith.constant 0 : index
    %c0_6 = arith.constant 0 : index
    %4 = vector.load %arg2[%c0_5, %c0_6] : memref<192x256xbf16, #tpu.memory_space<vmem>>, vector<192x256xbf16>
    %cst = arith.constant dense<0.000000e+00> : vector<16x256xf32>
    %5 = tpu.matmul %3, %4, %cst {dimension_numbers = #tpu.dot_dimension_numbers<[1], [0], [0], [1], [0, 0, 1, 1], [], []>} : vector<16x192xbf16>, vector<192x256xbf16>, vector<16x256xf32> -> vector<16x256xf32>
    %6 = vector.extract_strided_slice %5 {offsets = [0, 0], sizes = [16, 128], strides = [1, 1]} : vector<16x256xf32> to vector<16x128xf32>
    %7 = vector.broadcast %0 : vector<1x128xf32> to vector<16x128xf32>
    %8 = arith.addf %6, %7 : vector<16x128xf32>
    %cst_7 = arith.constant 0.000000e+00 : f32
    %9 = vector.broadcast %cst_7 : f32 to vector<16x128xf32>
    %10 = arith.maximumf %8, %9 : vector<16x128xf32>
    %11 = vector.extract_strided_slice %5 {offsets = [0, 128], sizes = [16, 128], strides = [1, 1]} : vector<16x256xf32> to vector<16x128xf32>
    %12 = vector.broadcast %1 : vector<1x128xf32> to vector<16x128xf32>
    %13 = arith.addf %11, %12 : vector<16x128xf32>
    %cst_8 = arith.constant 0.000000e+00 : f32
    %14 = vector.broadcast %cst_8 : f32 to vector<1x128xf32>
    %15 = vector.extract_strided_slice %10 {offsets = [0, 0], sizes = [15, 128], strides = [1, 1]} : vector<16x128xf32> to vector<15x128xf32>
    %16 = tpu.concatenate %14, %15 in 0 : vector<1x128xf32>, vector<15x128xf32> -> vector<16x128xf32>
    %17 = vector.extract_strided_slice %10 {offsets = [1, 0], sizes = [15, 128], strides = [1, 1]} : vector<16x128xf32> to vector<15x128xf32>
    %18 = tpu.concatenate %17, %14 in 0 : vector<15x128xf32>, vector<1x128xf32> -> vector<16x128xf32>
    %19 = tpu.concatenate %16, %10, %18 in 1 : vector<16x128xf32>, vector<16x128xf32>, vector<16x128xf32> -> vector<16x384xf32>
    %20 = arith.truncf %19 : vector<16x384xf32> to vector<16x384xbf16>
    %c0_9 = arith.constant 0 : index
    %c0_10 = arith.constant 0 : index
    %21 = vector.load %arg3[%c0_9, %c0_10] : memref<384x128xbf16, #tpu.memory_space<vmem>>, vector<384x128xbf16>
    %cst_11 = arith.constant dense<0.000000e+00> : vector<16x128xf32>
    %22 = tpu.matmul %20, %21, %cst_11 {dimension_numbers = #tpu.dot_dimension_numbers<[1], [0], [0], [1], [0, 0, 1, 1], [], []>} : vector<16x384xbf16>, vector<384x128xbf16>, vector<16x128xf32> -> vector<16x128xf32>
    %23 = vector.broadcast %2 : vector<1x128xf32> to vector<16x128xf32>
    %24 = arith.addf %22, %23 : vector<16x128xf32>
    %25 = arith.addf %24, %13 : vector<16x128xf32>
    %cst_12 = arith.constant 0.000000e+00 : f32
    %26 = vector.broadcast %cst_12 : f32 to vector<16x128xf32>
    %27 = arith.maximumf %25, %26 : vector<16x128xf32>
    %c0_13 = arith.constant 0 : index
    %c0_14 = arith.constant 0 : index
    %28 = vector.load %arg5[%c0_13, %c0_14] : memref<16x128xf32, #tpu.memory_space<vmem>>, vector<16x128xf32>
    tpu.vector_store %arg5[%c0_13, %c0_14], %27 {strides = array<i32>} : memref<16x128xf32, #tpu.memory_space<vmem>>, vector<16x128xf32>,
    return
  }
  func.func @transform_0(%arg0: i32) -> (i32, i32) {
    %c0_i32 = arith.constant 0 : i32
    %c0_i32_0 = arith.constant 0 : i32
    return %arg0, %c0_i32 : i32, i32
  }
  func.func @transform_1(%arg0: i32) -> (i32, i32) {
    %c0_i32 = arith.constant 0 : i32
    %c0_i32_0 = arith.constant 0 : i32
    %c0_i32_1 = arith.constant 0 : i32
    return %c0_i32, %c0_i32_0 : i32, i32
  }
  func.func @transform_2(%arg0: i32) -> (i32, i32) {
    %c0_i32 = arith.constant 0 : i32
    %c0_i32_0 = arith.constant 0 : i32
    %c0_i32_1 = arith.constant 0 : i32
    return %c0_i32, %c0_i32_0 : i32, i32
  }
  func.func @transform_3(%arg0: i32) -> (i32, i32) {
    %c0_i32 = arith.constant 0 : i32
    %c0_i32_0 = arith.constant 0 : i32
    %c0_i32_1 = arith.constant 0 : i32
    return %c0_i32, %c0_i32_0 : i32, i32
  }
  func.func @transform_4(%arg0: i32) -> (i32, i32) {
    %c0_i32 = arith.constant 0 : i32
    %c0_i32_0 = arith.constant 0 : i32
    return %arg0, %c0_i32 : i32, i32
  }
}

</mosaic_0001>

<bundles_post_ra>
// kernel: tile.43
= control target key start
LH: loop header
LB: loop body
LE: loop exit
PB: predicated region body
PF: predicated region fallthrough
CT: control target
= control target key end

     0   :  { %s28_s0 = inlined_call_operand.vmem [shape: f32[8], index: 0, kind: input, shape index: {}]   ;;  %s29_s1 = inlined_call_operand.vmem [shape: f32[16,8], index: 1, kind: output, shape index: {}]  }
   0x1   :  { %v4_v0 = vld [vmem:[%s28_s0] ss:$0 sm:$0xff] }
   0x2   :  { %5 = vst [vmem:[%s29_s1] sm:$0xff] %v4_v0  ;;  %8 = vst [vmem:[%s29_s1 + $0x8] sm:$0xff] %v4_v0 }

// kernel: mul.51
= control target key start
LH: loop header
LB: loop body
LE: loop exit
PB: predicated region body
PF: predicated region fallthrough
CT: control target
= control target key end

     0   :  { %s133_s10 = smov 120   ;;  %s134_s11 = smov 104   ;;  %vm3_vm0 = vcmask 64512   ;;  %vm9_vm1 = vcmask 1048512   ;;  %vm15_vm2 = vcmask 982912   ;;  %vm21_vm3 = vcmask 917312   ;;  %s209_s0 = inlined_call_operand.vmem [shape: f32[16,8], index: 0, kind: input, shape index: {}]   ;;  %s210_s1 = inlined_call_operand.vmem [shape: f32[128], index: 1, kind: output, shape index: {}]  }
   0x1   :  { %v103_v0 = vld [vmem:[%s209_s0 + $0xf] sm:$0x1]   ;;  %v105_v1 = vld [vmem:[%s209_s0 + $0xd] sm:$0x1]   ;;  %v104_v2 = vld [vmem:[%s209_s0 + $0xe] sm:$0x1]  }
   0x2   :  { %7 = vrot.lane.b32.xlu0 %v103_v0, %s133_s10  ;;  %19 = vrot.lane.b32.xlu1 %v105_v1, %s134_s11  ;;  %v106_v3 = vld [vmem:[%s209_s0 + $0xc] sm:$0x1]   ;;  %s135_s16 = smov 112   ;;  %s136_s17 = smov 96   ;;  %v107_v4 = vld [vmem:[%s209_s0 + $0xb] sm:$0x1]  }
   0x3   :  { %v108_v5 = vld [vmem:[%s209_s0 + $0xa] sm:$0x1]   ;;  %v2_v6 = vld [vmem:[%s209_s0] sm:$0x1]   ;;  %s137_s24 = smov 88   ;;  %s138_s25 = smov 80  }
   0x4   :  { %4 = vst.msk [vmem:[#allocation0] sm:$0x1] %vm3_vm0, %v2_v6   ;;  %v109_v7 = vld [vmem:[%s209_s0 + $0x9] sm:$0x1]   ;;  %v110_v8 = vld [vmem:[%s209_s0 + $0x8] sm:$0x1]  }
   0x5   :  { %s139_s30 = smov 72   ;;  %s140_s2 = smov 64   ;;  %v111_v9 = vld [vmem:[%s209_s0 + $0x7] sm:$0x1]   ;;  %v112_v10 = vld [vmem:[%s209_s0 + $0x6] sm:$0x1]  }
   0x6   :  { %13 = vrot.lane.b32.xlu0 %v104_v2, %s135_s16  ;;  %25 = vrot.lane.b32.xlu1 %v106_v3, %s136_s17  ;;  %s141_s7 = smov 56   ;;  %s142_s8 = smov 48   ;;  %v113_v11 = vld [vmem:[%s209_s0 + $0x5] sm:$0x1]   ;;  %v114_v12 = vld [vmem:[%s209_s0 + $0x4] sm:$0x1]  }
   0x7   :  { %s143_s13 = smov 40   ;;  %s144_s14 = smov 32   ;;  %v115_v13 = vld [vmem:[%s209_s0 + $0x3] sm:$0x1]   ;;  %v116_v14 = vld [vmem:[%s209_s0 + $0x2] sm:$0x1]  }
   0x8   :  { %s145_s19 = smov 24   ;;  %s146_s20 = smov 16   ;;  %v117_v15 = vld [vmem:[%s209_s0 + $0x1] sm:$0x1]   ;;  %vm27_vm4 = vcmask 851712   ;;  %vm33_vm5 = vcmask 786112  }
   0x9   :  { %s147_s0 = smov 8   ;;  %vm39_vm6 = vcmask 720512   ;;  %vm45_vm7 = vcmask 654912   ;;  %vm51_vm8 = vcmask 589312   ;;  %vm57_vm9 = vcmask 523712  }
   0xa   :  { %31 = vrot.lane.b32.xlu0 %v107_v4, %s137_s24  ;;  %37 = vrot.lane.b32.xlu1 %v108_v5, %s138_s25  ;;  %vm63_vm10 = vcmask 458112   ;;  %vm69_vm11 = vcmask 392512   ;;  %vm75_vm12 = vcmask 326912   ;;  %vm81_vm13 = vcmask 261312  }
   0xb   :  { %vm87_vm14 = vcmask 195712   ;;  %vm93_vm15 = vcmask 130112  }
   0xe   :  { %43 = vrot.lane.b32.xlu0 %v109_v7, %s139_s30  ;;  %49 = vrot.lane.b32.xlu1 %v110_v8, %s140_s2 }
  0x12   :  { %55 = vrot.lane.b32.xlu0 %v111_v9, %s141_s7  ;;  %61 = vrot.lane.b32.xlu1 %v112_v10, %s142_s8 }
  0x16   :  { %67 = vrot.lane.b32.xlu0 %v113_v11, %s143_s13  ;;  %73 = vrot.lane.b32.xlu1 %v114_v12, %s144_s14 }
  0x1a   :  { %79 = vrot.lane.b32.xlu0 %v115_v13, %s145_s19  ;;  %85 = vrot.lane.b32.xlu1 %v116_v14, %s146_s20 }
  0x1e   :  { %91 = vrot.lane.b32.xlu0 %v117_v15, %s147_s0 }
  0x74   :  { %v8_v16 = vpop.permute.xlu0 %7   ;;  %v20_v17 = vpop.permute.xlu1 %19  }
  0x75   :  { %10 = vst.msk [vmem:[#allocation0] sm:$0x1] %vm9_vm1, %v8_v16  }
  0x78   :  { %v14_v18 = vpop.permute.xlu0 %13   ;;  %v26_v19 = vpop.permute.xlu1 %25  }
  0x79   :  { %16 = vst.msk [vmem:[#allocation0] sm:$0x1] %vm15_vm2, %v14_v18  }
  0x7a   :  { %22 = vst.msk [vmem:[#allocation0] sm:$0x1] %vm21_vm3, %v20_v17  }
  0x7b   :  { %28 = vst.msk [vmem:[#allocation0] sm:$0x1] %vm27_vm4, %v26_v19  }
  0x7c   :  { %v32_v20 = vpop.permute.xlu0 %31   ;;  %v38_v21 = vpop.permute.xlu1 %37  }
  0x7d   :  { %34 = vst.msk [vmem:[#allocation0] sm:$0x1] %vm33_vm5, %v32_v20  }
  0x7e   :  { %40 = vst.msk [vmem:[#allocation0] sm:$0x1] %vm39_vm6, %v38_v21  }
  0x80   :  { %v44_v22 = vpop.permute.xlu0 %43   ;;  %v50_v23 = vpop.permute.xlu1 %49  }
  0x81   :  { %46 = vst.msk [vmem:[#allocation0] sm:$0x1] %vm45_vm7, %v44_v22  }
  0x82   :  { %52 = vst.msk [vmem:[#allocation0] sm:$0x1] %vm51_vm8, %v50_v23  }
  0x84   :  { %v56_v24 = vpop.permute.xlu0 %55   ;;  %v62_v25 = vpop.permute.xlu1 %61  }
  0x85   :  { %58 = vst.msk [vmem:[#allocation0] sm:$0x1] %vm57_vm9, %v56_v24  }
  0x86   :  { %64 = vst.msk [vmem:[#allocation0] sm:$0x1] %vm63_vm10, %v62_v25  }
  0x88   :  { %v68_v26 = vpop.permute.xlu0 %67   ;;  %v74_v27 = vpop.permute.xlu1 %73  }
  0x89   :  { %70 = vst.msk [vmem:[#allocation0] sm:$0x1] %vm69_vm11, %v68_v26  }
  0x8a   :  { %76 = vst.msk [vmem:[#allocation0] sm:$0x1] %vm75_vm12, %v74_v27  }
  0x8c   :  { %v80_v28 = vpop.permute.xlu0 %79   ;;  %v86_v29 = vpop.permute.xlu1 %85  }
  0x8d   :  { %82 = vst.msk [vmem:[#allocation0] sm:$0x1] %vm81_vm13, %v80_v28  }
  0x8e   :  { %88 = vst.msk [vmem:[#allocation0] sm:$0x1] %vm87_vm14, %v86_v29  }
  0x90   :  { %v92_v30 = vpop.permute.xlu0 %91  }
  0x91   :  { %94 = vst.msk [vmem:[#allocation0] sm:$0x1] %vm93_vm15, %v92_v30  }
  0x98   :  { %v99_v31 = vld [vmem:[#allocation0] sm:$0x1] }
  0x99   :  { %102 = vst [vmem:[%s210_s1] sm:$0x1] %v99_v31 }

// kernel: tile.39
= control target key start
LH: loop header
LB: loop body
LE: loop exit
PB: predicated region body
PF: predicated region fallthrough
CT: control target
= control target key end

     0   :  { %s133_s10 = smov 120   ;;  %s134_s11 = smov 104   ;;  %vm3_vm0 = vcmask 64512   ;;  %vm9_vm1 = vcmask 1048512   ;;  %vm15_vm2 = vcmask 982912   ;;  %vm21_vm3 = vcmask 917312   ;;  %s209_s0 = inlined_call_operand.vmem [shape: f32[16,8], index: 0, kind: input, shape index: {}]   ;;  %s210_s1 = inlined_call_operand.vmem [shape: f32[1,128], index: 1, kind: output, shape index: {}]  }
   0x1   :  { %v103_v0 = vld [vmem:[%s209_s0 + $0xf] sm:$0x1]   ;;  %v105_v1 = vld [vmem:[%s209_s0 + $0xd] sm:$0x1]   ;;  %v104_v2 = vld [vmem:[%s209_s0 + $0xe] sm:$0x1]  }
   0x2   :  { %7 = vrot.lane.b32.xlu0 %v103_v0, %s133_s10  ;;  %19 = vrot.lane.b32.xlu1 %v105_v1, %s134_s11  ;;  %v106_v3 = vld [vmem:[%s209_s0 + $0xc] sm:$0x1]   ;;  %s135_s16 = smov 112   ;;  %s136_s17 = smov 96   ;;  %v107_v4 = vld [vmem:[%s209_s0 + $0xb] sm:$0x1]  }
   0x3   :  { %v108_v5 = vld [vmem:[%s209_s0 + $0xa] sm:$0x1]   ;;  %v2_v6 = vld [vmem:[%s209_s0] sm:$0x1]   ;;  %s137_s24 = smov 88   ;;  %s138_s25 = smov 80  }
   0x4   :  { %4 = vst.msk [vmem:[#allocation0] sm:$0x1] %vm3_vm0, %v2_v6   ;;  %v109_v7 = vld [vmem:[%s209_s0 + $0x9] sm:$0x1]   ;;  %v110_v8 = vld [vmem:[%s209_s0 + $0x8] sm:$0x1]  }
   0x5   :  { %s139_s30 = smov 72   ;;  %s140_s2 = smov 64   ;;  %v111_v9 = vld [vmem:[%s209_s0 + $0x7] sm:$0x1]   ;;  %v112_v10 = vld [vmem:[%s209_s0 + $0x6] sm:$0x1]  }
   0x6   :  { %13 = vrot.lane.b32.xlu0 %v104_v2, %s135_s16  ;;  %25 = vrot.lane.b32.xlu1 %v106_v3, %s136_s17  ;;  %s141_s7 = smov 56   ;;  %s142_s8 = smov 48   ;;  %v113_v11 = vld [vmem:[%s209_s0 + $0x5] sm:$0x1]   ;;  %v114_v12 = vld [vmem:[%s209_s0 + $0x4] sm:$0x1]  }
   0x7   :  { %s143_s13 = smov 40   ;;  %s144_s14 = smov 32   ;;  %v115_v13 = vld [vmem:[%s209_s0 + $0x3] sm:$0x1]   ;;  %v116_v14 = vld [vmem:[%s209_s0 + $0x2] sm:$0x1]  }
   0x8   :  { %s145_s19 = smov 24   ;;  %s146_s20 = smov 16   ;;  %v117_v15 = vld [vmem:[%s209_s0 + $0x1] sm:$0x1]   ;;  %vm27_vm4 = vcmask 851712   ;;  %vm33_vm5 = vcmask 786112  }
   0x9   :  { %s147_s0 = smov 8   ;;  %vm39_vm6 = vcmask 720512   ;;  %vm45_vm7 = vcmask 654912   ;;  %vm51_vm8 = vcmask 589312   ;;  %vm57_vm9 = vcmask 523712  }
   0xa   :  { %31 = vrot.lane.b32.xlu0 %v107_v4, %s137_s24  ;;  %37 = vrot.lane.b32.xlu1 %v108_v5, %s138_s25  ;;  %vm63_vm10 = vcmask 458112   ;;  %vm69_vm11 = vcmask 392512   ;;  %vm75_vm12 = vcmask 326912   ;;  %vm81_vm13 = vcmask 261312  }
   0xb   :  { %vm87_vm14 = vcmask 195712   ;;  %vm93_vm15 = vcmask 130112  }
   0xe   :  { %43 = vrot.lane.b32.xlu0 %v109_v7, %s139_s30  ;;  %49 = vrot.lane.b32.xlu1 %v110_v8, %s140_s2 }
  0x12   :  { %55 = vrot.lane.b32.xlu0 %v111_v9, %s141_s7  ;;  %61 = vrot.lane.b32.xlu1 %v112_v10, %s142_s8 }
  0x16   :  { %67 = vrot.lane.b32.xlu0 %v113_v11, %s143_s13  ;;  %73 = vrot.lane.b32.xlu1 %v114_v12, %s144_s14 }
  0x1a   :  { %79 = vrot.lane.b32.xlu0 %v115_v13, %s145_s19  ;;  %85 = vrot.lane.b32.xlu1 %v116_v14, %s146_s20 }
  0x1e   :  { %91 = vrot.lane.b32.xlu0 %v117_v15, %s147_s0 }
  0x74   :  { %v8_v16 = vpop.permute.xlu0 %7   ;;  %v20_v17 = vpop.permute.xlu1 %19  }
  0x75   :  { %10 = vst.msk [vmem:[#allocation0] sm:$0x1] %vm9_vm1, %v8_v16  }
  0x78   :  { %v14_v18 = vpop.permute.xlu0 %13   ;;  %v26_v19 = vpop.permute.xlu1 %25  }
  0x79   :  { %16 = vst.msk [vmem:[#allocation0] sm:$0x1] %vm15_vm2, %v14_v18  }
  0x7a   :  { %22 = vst.msk [vmem:[#allocation0] sm:$0x1] %vm21_vm3, %v20_v17  }
  0x7b   :  { %28 = vst.msk [vmem:[#allocation0] sm:$0x1] %vm27_vm4, %v26_v19  }
  0x7c   :  { %v32_v20 = vpop.permute.xlu0 %31   ;;  %v38_v21 = vpop.permute.xlu1 %37  }
  0x7d   :  { %34 = vst.msk [vmem:[#allocation0] sm:$0x1] %vm33_vm5, %v32_v20  }
  0x7e   :  { %40 = vst.msk [vmem:[#allocation0] sm:$0x1] %vm39_vm6, %v38_v21  }
  0x80   :  { %v44_v22 = vpop.permute.xlu0 %43   ;;  %v50_v23 = vpop.permute.xlu1 %49  }
  0x81   :  { %46 = vst.msk [vmem:[#allocation0] sm:$0x1] %vm45_vm7, %v44_v22  }
  0x82   :  { %52 = vst.msk [vmem:[#allocation0] sm:$0x1] %vm51_vm8, %v50_v23  }
  0x84   :  { %v56_v24 = vpop.permute.xlu0 %55   ;;  %v62_v25 = vpop.permute.xlu1 %61  }
  0x85   :  { %58 = vst.msk [vmem:[#allocation0] sm:$0x1] %vm57_vm9, %v56_v24  }
  0x86   :  { %64 = vst.msk [vmem:[#allocation0] sm:$0x1] %vm63_vm10, %v62_v25  }
  0x88   :  { %v68_v26 = vpop.permute.xlu0 %67   ;;  %v74_v27 = vpop.permute.xlu1 %73  }
  0x89   :  { %70 = vst.msk [vmem:[#allocation0] sm:$0x1] %vm69_vm11, %v68_v26  }
  0x8a   :  { %76 = vst.msk [vmem:[#allocation0] sm:$0x1] %vm75_vm12, %v74_v27  }
  0x8c   :  { %v80_v28 = vpop.permute.xlu0 %79   ;;  %v86_v29 = vpop.permute.xlu1 %85  }
  0x8d   :  { %82 = vst.msk [vmem:[#allocation0] sm:$0x1] %vm81_vm13, %v80_v28  }
  0x8e   :  { %88 = vst.msk [vmem:[#allocation0] sm:$0x1] %vm87_vm14, %v86_v29  }
  0x90   :  { %v92_v30 = vpop.permute.xlu0 %91  }
  0x91   :  { %94 = vst.msk [vmem:[#allocation0] sm:$0x1] %vm93_vm15, %v92_v30  }
  0x98   :  { %v99_v31 = vld [vmem:[#allocation0] sm:$0x1] }
  0x99   :  { %102 = vst [vmem:[%s210_s1] sm:$0x1] %v99_v31 }

// kernel: residual_block.1
= control target key start
LH: loop header
LB: loop body
LE: loop exit
PB: predicated region body
PF: predicated region fallthrough
CT: control target
= control target key end

     0   :  { %s1018_s15 = smov 0   ;;  %s1201_s0 = inlined_call_operand.vmem [shape: bf16[32,192], index: 0, kind: input, shape index: {}]   ;;  %s1202_s1 = inlined_call_operand.vmem [shape: bf16[192,256], index: 1, kind: input, shape index: {}]   ;;  %s1203_s2 = inlined_call_operand.vmem [shape: bf16[384,128], index: 2, kind: input, shape index: {}]   ;;  %s1204_s3 = inlined_call_operand.vmem [shape: f32[3,128], index: 3, kind: input, shape index: {}]   ;;  %s1205_s4 = inlined_call_operand.vmem [shape: f32[32,128], index: 4, kind: output, shape index: {}]  }
   0x1 LB: > { %s783_s16 = sadd.s32 4294967295, %s988_s15   ;;  %p787_p0 = scmp.ge.s32.totalorder %s988_s15, 1  ;;  %s988_s15 = sphi %s1018_s15, %s14_s15  }
   0x2   : > { %p164_p1 = scmp.lt.s32.totalorder %s988_s15, 3 }
   0x4   : > { %p165_p2 = pnand %p787_p0, %p164_p1 }
   0x5   : > { %s788_s19 = sshll.u32 (!%p165_p2), %s783_s16, 1 }
   0x6   : > { %168 = sbr.rel (%p165_p2) target bundleno = 502 (0x1f6), region = 36  ;;  %p192_p3 = scmp.lt.s32.totalorder (!%p165_p2), %s788_s19, 3 }
   0xb   : > { %v919_v0 = vld [vmem:[%s1202_s1 + $0x74] ss:$8 sps:$4 sm:$0xff]   ;;  %v921_v1 = vld [vmem:[%s1202_s1 + $0x70] ss:$8 sps:$4 sm:$0xff]   ;;  %v922_v2 = vld [vmem:[%s1202_s1 + $0x64] ss:$8 sps:$4 sm:$0xff]  }
   0xc   : > { %367 = vmatprep.subr.bf16.mxu0 %v919_v0  ;;  %v924_v3 = vld [vmem:[%s1202_s1 + $0x60] ss:$8 sps:$4 sm:$0xff]   ;;  %v925_v4 = vld [vmem:[%s1202_s1 + $0x54] ss:$8 sps:$4 sm:$0xff]   ;;  %v927_v5 = vld [vmem:[%s1202_s1 + $0x50] ss:$8 sps:$4 sm:$0xff]  }
   0xd   : > { %368 = vmatpush1.bf16.msra.mxu0 %v921_v1  ;;  %s1207_s19 = smov (!%p192_p3, %s788_s19), 3  ;;  %v928_v6 = vld [vmem:[%s1202_s1 + $0x44] ss:$8 sps:$4 sm:$0xff]   ;;  %v930_v7 = vld [vmem:[%s1202_s1 + $0x40] ss:$8 sps:$4 sm:$0xff]   ;;  %vm363_vm0 = vcmask 523264  }
   0xe   : > { %369 = vmatprep.subr.bf16.mxu0 %v922_v2  ;;  %s856_s8 = sshll.u32 %s1207_s19, 3  ;;  %v931_v8 = vld [vmem:[%s1202_s1 + $0x34] ss:$8 sps:$4 sm:$0xff]   ;;  %v933_v9 = vld [vmem:[%s1202_s1 + $0x30] ss:$8 sps:$4 sm:$0xff]   ;;  %v962_v18 = vld [vmem:[%s1203_s2 + $0x68] sm:$0xff]  }
   0xf   : > { %s1061_s13 = scalar_lea.vmem %s1201_s0, %s856_s8  ;;  %v934_v10 = vld [vmem:[%s1202_s1 + $0x24] ss:$8 sps:$4 sm:$0xff]   ;;  %v936_v11 = vld [vmem:[%s1202_s1 + $0x20] ss:$8 sps:$4 sm:$0xff]   ;;  %v937_v13 = vld [vmem:[%s1202_s1 + $0x14] ss:$8 sps:$4 sm:$0xff]   ;;  %s202_s9 = scalar_lea.vmem %s1205_s4, %s856_s8 }
  0x10   : > { %v957_v12 = vld [vmem:[%s1061_s13 + $0x4] ss:$8 sps:$4 sm:$0xff]   ;;  %v958_v14 = vld [vmem:[%s1203_s2 + $0x78] sm:$0xff]   ;;  %v960_v16 = vld [vmem:[%s1203_s2 + $0x70] sm:$0xff]   ;;  %v990_v42 = vmov 0.0   ;;  %vm426_vm1 = vcmask 1040384  }
  0x11   : > { %370 = vmatpush1.bf16.msra.mxu0 %v924_v3  ;;  %819 = vmatprep.mubr.msk.bf16.mxu0 %vm363_vm0, %v957_v12  ;;  %v959_v15 = vld [vmem:[%s1203_s2 + $0x38] sm:$0xff]   ;;  %v961_v17 = vld [vmem:[%s1203_s2 + $0x30] sm:$0xff]   ;;  %v940_v20 = vld [vmem:[%s1202_s1 + $0x4] ss:$8 sps:$4 sm:$0xff]   ;;  %vm991_vm3 = vmmov 1   ;;  %vm992_vm5 = vmmov 0  }
  0x12   : > { %371 = vmatprep.subr.bf16.mxu0 %v925_v4  ;;  %857 = vmatprep.subr.bf16.mxu1 %v958_v14  ;;  %v939_v19 = vld [vmem:[%s1202_s1 + $0x10] ss:$8 sps:$4 sm:$0xff]   ;;  %v942_v21 = vld [vmem:[%s1202_s1] ss:$8 sps:$4 sm:$0xff]   ;;  %v943_v24 = vld [vmem:[%s1202_s1 + $0xb4] ss:$8 sps:$4 sm:$0xff]  }
  0x13   : > { %858 = vmatpush3.bf16.msra.mxu1 %v959_v15  ;;  %v963_v22 = vld [vmem:[%s1203_s2 + $0x28] sm:$0xff]   ;;  %v964_v23 = vld [vmem:[%s1203_s2 + $0x60] sm:$0xff]   ;;  %v966_v26 = vld [vmem:[%s1203_s2 + $0x58] sm:$0xff]   ;;  %vm433_vm6 = vcmask 1046528  }
  0x14   : > { %859 = vmatprep.subr.bf16.mxu1 %v960_v16  ;;  %v965_v25 = vld [vmem:[%s1203_s2 + $0x20] sm:$0xff]   ;;  %v945_v27 = vld [vmem:[%s1202_s1 + $0xb0] ss:$8 sps:$4 sm:$0xff]   ;;  %v949_v31 = vld [vmem:[%s1202_s1 + $0x94] ss:$8 sps:$4 sm:$0xff]  }
  0x15   : > { %372 = vmatpush1.bf16.msra.mxu0 %v927_v5  ;;  %v946_v28 = vld [vmem:[%s1202_s1 + $0xa4] ss:$8 sps:$4 sm:$0xff]   ;;  %v967_v29 = vld [vmem:[%s1203_s2 + $0x18] sm:$0xff]   ;;  %v948_v30 = vld [vmem:[%s1202_s1 + $0xa0] ss:$8 sps:$4 sm:$0xff]  }
  0x16   : > { %373 = vmatprep.subr.bf16.mxu0 %v928_v6  ;;  %v951_v32 = vld [vmem:[%s1202_s1 + $0x90] ss:$8 sps:$4 sm:$0xff]   ;;  %v952_v33 = vld [vmem:[%s1202_s1 + $0x84] ss:$8 sps:$4 sm:$0xff]   ;;  %v954_v34 = vld [vmem:[%s1202_s1 + $0x80] ss:$8 sps:$4 sm:$0xff]  }
  0x17   : > { %860 = vmatpush3.bf16.msra.mxu1 %v961_v17  ;;  %v955_v35 = vld [vmem:[%s1061_s13] ss:$8 sps:$4 sm:$0xff]   ;;  %v968_v36 = vld [vmem:[%s1203_s2 + $0x50] sm:$0xff]   ;;  %vm847_vm2 = vmneg %vm426_vm1 }
  0x18   : > { %861 = vmatprep.subr.bf16.mxu1 %v962_v18  ;;  %v969_v37 = vld [vmem:[%s1203_s2 + $0x10] sm:$0xff]   ;;  %v970_v38 = vld [vmem:[%s1203_s2 + $0x48] sm:$0xff]   ;;  %v972_v40 = vld [vmem:[%s1203_s2 + $0x40] sm:$0xff]  }
  0x19   : > { %374 = vmatpush1.bf16.msra.mxu0 %v930_v7  ;;  %v971_v39 = vld [vmem:[%s1203_s2 + $0x8] sm:$0xff]   ;;  %v973_v41 = vld [vmem:[%s1203_s2] sm:$0xff]   ;;  %vm848_vm4 = vmpackc.low %vm991_vm3, %vm847_vm2 }
  0x1a   : > { %375 = vmatprep.subr.bf16.mxu0 %v931_v8  ;;  %v820_v43 = vld [vmem:[%s1204_s3] ss:$0 sm:$0xff]  ;;  %v974_v55 = vld [vmem:[%s1203_s2 + $0xb8] sm:$0xff]   ;;  %v975_v57 = vld [vmem:[%s1203_s2 + $0xb0] sm:$0xff]  }
  0x1b   : > { %862 = vmatpush3.bf16.msra.mxu1 %v963_v22  ;;  %v976_v58 = vld [vmem:[%s1203_s2 + $0xa8] sm:$0xff]   ;;  %v977_v59 = vld [vmem:[%s1203_s2 + $0xa0] sm:$0xff]   ;;  %v978_v60 = vld [vmem:[%s1203_s2 + $0x98] sm:$0xff]  }
  0x1c   : > { %863 = vmatprep.subr.bf16.mxu1 %v964_v23  ;;  %v979_v61 = vld [vmem:[%s1203_s2 + $0x90] sm:$0xff]   ;;  %v980_v62 = vld [vmem:[%s1203_s2 + $0x88] sm:$0xff]   ;;  %v981_v1 = vld [vmem:[%s1203_s2 + $0x80] sm:$0xff]  }
  0x1d   : > { %376 = vmatpush1.bf16.msra.mxu0 %v933_v9  ;;  %vm851_vm7 = vmpackc.low %vm433_vm6, %vm991_vm3  ;;  %v822_v9 = vld [vmem:[%s1204_s3 + $0x2] ss:$0 sm:$0xff] }
  0x1e   : > { %377 = vmatprep.subr.bf16.mxu0 %v934_v10  ;;  %v821_v10 = vld [vmem:[%s1204_s3 + $0x1] ss:$0 sm:$0xff] }
  0x1f   : > { %864 = vmatpush3.bf16.msra.mxu1 %v965_v25 }
  0x20   : > { %865 = vmatprep.subr.bf16.mxu1 %v966_v26 }
  0x21   : > { %378 = vmatpush1.bf16.msra.mxu0 %v936_v11 }
  0x22   : > { %379 = vmatprep.subr.bf16.mxu0 %v937_v13 }
  0x23   : > { %866 = vmatpush3.bf16.msra.mxu1 %v967_v29 }
  0x24   : > { %867 = vmatprep.subr.bf16.mxu1 %v968_v36 }
  0x25   : > { %380 = vmatpush1.bf16.msra.mxu0 %v939_v19 }
  0x26   : > { %381 = vmatprep.subr.bf16.mxu0 %v940_v20 }
  0x27   : > { %868 = vmatpush3.bf16.msra.mxu1 %v969_v37 }
  0x28   : > { %869 = vmatprep.subr.bf16.mxu1 %v970_v38 }
  0x29   : > { %382 = vmatpush1.bf16.msra.mxu0 %v942_v21 }
  0x2a   : > { %391 = vmatprep.subr.bf16.mxu0 %v943_v24 }
  0x2b   : > { %870 = vmatpush3.bf16.msra.mxu1 %v971_v39 }
  0x2c   : > { %871 = vmatprep.subr.bf16.mxu1 %v972_v40 }
  0x2d   : > { %392 = vmatpush2.bf16.msra.mxu0 %v945_v27 }
  0x2e   : > { %393 = vmatprep.subr.bf16.mxu0 %v946_v28 }
  0x2f   : > { %872 = vmatpush3.bf16.msra.mxu1 %v973_v41 }
  0x30   : > { %888 = vmatprep.subr.bf16.mxu1 %v990_v42 }
  0x31   : > { %394 = vmatpush2.bf16.msra.mxu0 %v948_v30 }
  0x32   : > { %395 = vmatprep.subr.bf16.mxu0 %v949_v31 }
  0x35   : > { %396 = vmatpush2.bf16.msra.mxu0 %v951_v32 }
  0x36   : > { %397 = vmatprep.subr.bf16.mxu0 %v952_v33 }
  0x39   : > { %398 = vmatpush2.bf16.msra.mxu0 %v954_v34 }
  0x3c   : > { %400 = vmatmul.mubr.bf16.vlgmr.msra.gmra.mxu0 %v955_v35 }
  0xfc   : > { %v401_v44 = vpop.f32.mrf.mxu0 }
  0xfd   : > { %v414_v45 = vadd.f32 %v820_v43, %v401_v44 }
  0xfe   : > { %v403_v46 = vpop.f32.mrf.mxu0 }
  0xff   : > { %v416_v48 = vmax.f32 %v414_v45, 0.0  ;;  %v422_v14 = vadd.f32 %v821_v10, %v403_v46 }
 0x100   : > { %v405_v47 = vpop.f32.mrf.mxu0 }
 0x101   : > { %v415_v49 = vadd.f32 %v820_v43, %v405_v47  ;;  %v427_v51 = vrot.slane %v416_v48, 7  ;;  %v434_v0 = vrot.slane %v416_v48, 1 }
 0x102   : > { %v407_v16 = vpop.f32.mrf.mxu0 }
 0x103   : > { %v417_v50 = vmax.f32 %v415_v49, 0.0  ;;  %v423_v21 = vadd.f32 %v821_v10, %v407_v16 }
 0x105   : > { %v428_v52 = vrot.slane %v417_v50, 7  ;;  %v441_v53 = vpack.c.bf16 %v417_v50, %v416_v48  ;;  %v435_v63 = vrot.slane %v417_v50, 1 }
 0x107   : > { %671 = vmatprep.mubr.bf16.mxu1 %v441_v53  ;;  %v429_v54 = vsel %vm426_vm1, %v427_v51, %v428_v52  ;;  %v436_v2 = vsel %vm433_vm6, %v434_v0, %v435_v63 }
 0x108   : > { %v849_v56 = vpack.c.bf16 %v429_v54, %v427_v51  ;;  %v852_v3 = vpack.c.bf16 %v435_v63, %v436_v2 }
 0x10a   : > { %850 = vmatmul.mubr.msk.bf16.vlgmr.msra.gmra.mxu1 %vm848_vm4, %v849_v56 }
 0x10b   : > { %889 = vmatpush3.bf16.msra.mxu1 %v974_v55  ;;  %904 = vmatprep.mubr.msk.bf16.mxu1 %vm992_vm5, %v990_v42 }
 0x10c   : > { %890 = vmatprep.subr.bf16.mxu1 %v990_v42 }
 0x10f   : > { %891 = vmatpush3.bf16.msra.mxu1 %v975_v57 }
 0x110   : > { %892 = vmatprep.subr.bf16.mxu1 %v990_v42 }
 0x113   : > { %893 = vmatpush3.bf16.msra.mxu1 %v976_v58 }
 0x114   : > { %894 = vmatprep.subr.bf16.mxu1 %v990_v42 }
 0x117   : > { %895 = vmatpush3.bf16.msra.mxu1 %v977_v59 }
 0x118   : > { %896 = vmatprep.subr.bf16.mxu1 %v990_v42 }
 0x11b   : > { %897 = vmatpush3.bf16.msra.mxu1 %v978_v60 }
 0x11c   : > { %898 = vmatprep.subr.bf16.mxu1 %v990_v42 }
 0x11f   : > { %899 = vmatpush3.bf16.msra.mxu1 %v979_v61 }
 0x120   : > { %900 = vmatprep.subr.bf16.mxu1 %v990_v42 }
 0x123   : > { %901 = vmatpush3.bf16.msra.mxu1 %v980_v62 }
 0x124   : > { %902 = vmatprep.subr.bf16.mxu1 %v990_v42 }
 0x127   : > { %903 = vmatpush3.bf16.msra.mxu1 %v981_v1 }
 0x12a   : > { %905 = vmatmul.mubr.msk.bf16.vlgmr.msra.gmra.mxu1 %vm851_vm7, %v852_v3 }
 0x1ca   : > { %v873_v4 = vpop.f32.mrf.mxu1 }
 0x1cc   : > { %v874_v5 = vpop.f32.mrf.mxu1 }
 0x1cd   : > { %v875_v7 = vadd.f32 %v874_v5, %v873_v4 }
 0x1ce   : > { %v876_v6 = vpop.f32.mrf.mxu1 }
 0x1cf   : > { %v674_v12 = vadd.f32 %v875_v7, %v822_v9 }
 0x1d0   : > { %v877_v8 = vpop.f32.mrf.mxu1 }
 0x1d1   : > { %v878_v11 = vadd.f32 %v877_v8, %v876_v6 }
 0x1d3   : > { %v677_v19 = vadd.f32 %v878_v11, %v822_v9 }
 0x1ea   : > { %v714_v13 = vpop.f32.mrf.mxu1 }
 0x1eb   : > { %v715_v15 = vadd.f32 %v714_v13, %v674_v12 }
 0x1ec   : > { %v906_v17 = vpop.f32.mrf.mxu1 }
 0x1ed   : > { %v721_v18 = vadd.f32 %v715_v15, %v422_v14 }
 0x1ee   : > { %v717_v20 = vpop.f32.mrf.mxu1 }
 0x1ef   : > { %v723_v22 = vmax.f32 %v721_v18, 0.0  ;;  %v718_v23 = vadd.f32 %v717_v20, %v677_v19 }
 0x1f0   : > { %v907_v24 = vpop.f32.mrf.mxu1 }
 0x1f1   : > { %725 = vst [vmem:[%s202_s9] sm:$0xff] %v723_v22  ;;  %v722_v25 = vadd.f32 %v718_v23, %v423_v21 }
 0x1f3   : > { %v724_v26 = vmax.f32 %v722_v25, 0.0 }
 0x1f5   : > { %726 = vst [vmem:[%s202_s9 + $0x8] sm:$0xff] %v724_v26 }
 0x1f6 PF: > { %s14_s15 = sadd.s32 1, %s988_s15  }
 0x1f7   : > { %p11_p4 = scmp.ge.s32.totalorder %s14_s15, 4  }
 0x1f9   :  { %13 = sbr.rel (!%p11_p4) target bundleno = 1 (0x1), region = 66 }

</bundles_post_ra>
